<compile_context>
chip_gen: v5e
topology: v5e:2x2
jax: 0.10.0
libtpu: 0.0.40
codegen_flags: <defaults>
</compile_context>

<pallas_src>
import functools

import jax
import jax.numpy as jnp
from jax.experimental import pallas as pl
from jax.experimental.pallas import tpu as pltpu


def _round_up(x: int, m: int) -> int:
    return ((x + m - 1) // m) * m


def fc_layer_kernel(x_ref, w_ref, b_ref, o_ref, xact_ref, *, use_activation):
    # Cache (tanh(x) or x) as bf16 once per M-tile; reuse for every N-tile.
    @pl.when(pl.program_id(1) == 0)
    def _():
        x = x_ref[...].astype(jnp.float32)
        if use_activation:
            x = jnp.tanh(x)                              # EUP, f32
        xact_ref[...] = x.astype(jnp.bfloat16)

    acc = jnp.dot(xact_ref[...], w_ref[...],             # bf16 x bf16 -> f32 MXU
                  preferred_element_type=jnp.float32)
    o_ref[...] = (acc + b_ref[...].astype(jnp.float32)).astype(o_ref.dtype)


def fc_layer(x, w_t, b, use_activation=True):
    """FCLayer forward.  x: (M, K); w_t: (K, N) (= W.T of nn.Linear); b: (N,) or (1, N)."""
    # TODO(synk): dropout_rate != 0.0 would need pltpu.prng_seed/prng_random_bits
    # masking inside the kernel; the default (p=0.0 / eval mode) is the identity.
    M, K = x.shape
    K2, N = w_t.shape
    assert K == K2
    b = jnp.asarray(b).reshape(1, N)
    out_dtype = x.dtype

    # ---- tile sizes / padding (lane-dense, (8,128)-legal blocks) -------------
    tm = min(256, _round_up(M, 8))
    Mp = _round_up(M, tm)
    Np = _round_up(N, 128)
    tn = 256 if Np % 256 == 0 else 128
    Kp = _round_up(K, 128)

    x_p = jnp.zeros((Mp, Kp), x.dtype).at[:M, :K].set(x)
    w_p = jnp.zeros((Kp, Np), jnp.bfloat16).at[:K, :N].set(w_t.astype(jnp.bfloat16))
    b_p = jnp.zeros((1, Np), jnp.float32).at[:, :N].set(b.astype(jnp.float32))

    grid = (Mp // tm, Np // tn)
    kernel = functools.partial(fc_layer_kernel, use_activation=use_activation)

    out = pl.pallas_call(
        kernel,
        out_shape=jax.ShapeDtypeStruct((Mp, Np), jnp.float32),
        grid=grid,
        in_specs=[
            pl.BlockSpec((tm, Kp), lambda i, j: (i, 0)),   # x: new tile per i only
            pl.BlockSpec((Kp, tn), lambda i, j: (0, j)),   # weight column-tile
            pl.BlockSpec((1, tn), lambda i, j: (0, j)),    # bias column-tile
        ],
        out_specs=pl.BlockSpec((tm, tn), lambda i, j: (i, j)),
        scratch_shapes=[pltpu.VMEM((tm, Kp), jnp.bfloat16)],   # cached activation
        compiler_params=pltpu.CompilerParams(
            dimension_semantics=("parallel", "arbitrary")),
        cost_estimate=pl.CostEstimate(
            flops=2 * Mp * Np * Kp,
            transcendentals=Mp * Kp if use_activation else 0,
            bytes_accessed=(Mp * Kp * x.dtype.itemsize + Kp * Np * 2
                            + Np * 4 + Mp * Np * 4)),
    )(x_p, w_p, b_p)

    return out[:M, :N].astype(out_dtype)


# ------------------------------ references ----------------------------------
def fc_layer_reference_f32(x, w_t, b, use_activation=True):
    h = jnp.tanh(x) if use_activation else x
    return h @ w_t + jnp.asarray(b).reshape(1, -1)


def fc_layer_reference_bf16(x, w_t, b, use_activation=True):
    # Mirrors the kernel's bf16 matmul operands (f32 accumulate) for a tight check.
    h = jnp.tanh(x) if use_activation else x
    h = h.astype(jnp.bfloat16).astype(jnp.float32)
    w = w_t.astype(jnp.bfloat16).astype(jnp.float32)
    return h @ w + jnp.asarray(b).reshape(1, -1)


def _make_linear_params(key, input_dim, output_dim):
    kw, kb = jax.random.split(key)
    bound = 1.0 / float(jnp.sqrt(jnp.float32(input_dim)))
    W = jax.random.uniform(kw, (output_dim, input_dim),
                           minval=-bound, maxval=bound, dtype=jnp.float32)
    bias = jax.random.uniform(kb, (output_dim,),
                              minval=-bound, maxval=bound, dtype=jnp.float32)
    return W.T, bias          # kernel takes W.T, i.e. (input_dim, output_dim)


def _check(x, w_t, bias, use_activation):
    out = jax.block_until_ready(fc_layer(x, w_t, bias, use_activation))
    ref_bf = fc_layer_reference_bf16(x, w_t, bias, use_activation)
    ref_f32 = fc_layer_reference_f32(x, w_t, bias, use_activation)
    assert out.shape == ref_f32.shape
    assert jnp.allclose(out, ref_bf, atol=5e-3, rtol=5e-3), "mismatch vs bf16 reference"
    assert jnp.allclose(out, ref_f32, atol=3e-2, rtol=3e-2), "mismatch vs f32 reference"


if __name__ == "__main__":
    key = jax.random.PRNGKey(0)
    k1, k2, k3, k4 = jax.random.split(key, 4)

    # Case 1: toy FC-head shapes (non-aligned -> exercises padding + slicing).
    x_small = jax.random.normal(k1, (24, 48), dtype=jnp.float32)
    w_t_s, b_s = _make_linear_params(k2, 48, 40)
    _check(x_small, w_t_s, b_s, use_activation=True)
    _check(x_small, w_t_s, b_s, use_activation=False)

    # Case 2: larger shapes -> multi-tile (2 x 3) grid, tanh-cache reuse across
    # N-tiles and megacore-parallel M axis.
    x_big = jax.random.normal(k3, (512, 256), dtype=jnp.float32)
    w_t_b, b_b = _make_linear_params(k4, 256, 384)
    _check(x_big, w_t_b, b_b, use_activation=True)

    print("KERNEL_OK")
</pallas_src>

<mosaic_0001>
module attributes {stable_mosaic.version = 11 : i64} {
  func.func @fc_layer_kernel(%arg0: i32, %arg1: i32, %arg2: memref<24x128xf32, #tpu.memory_space<vmem>>, %arg3: memref<128x128xbf16, #tpu.memory_space<vmem>>, %arg4: memref<1x128xf32, #tpu.memory_space<vmem>>, %arg5: memref<24x128xf32, #tpu.memory_space<vmem>>, %arg6: memref<24x128xbf16, #tpu.memory_space<vmem>>) attributes {dimension_semantics = [#tpu.dimension_semantics<parallel>, #tpu.dimension_semantics<arbitrary>], iteration_bounds = array<i64: 1, 1>, scalar_prefetch = 0 : i64, scratch_operands = 1 : i64, tpu.core_type = #tpu.core_type<tc>, window_params = [{transform_indices = @transform_0, window_bounds = array<i64: 24, 128>}, {transform_indices = @transform_1, window_bounds = array<i64: 128, 128>}, {transform_indices = @transform_2, window_bounds = array<i64: 1, 128>}, {transform_indices = @transform_3, window_bounds = array<i64: 24, 128>}]} {
    %c0_i32 = arith.constant 0 : i32
    %0 = arith.cmpi eq, %arg1, %c0_i32 : i32
    %1 = arith.extui %0 : i1 to i32
    %c0_i32_0 = arith.constant 0 : i32
    %2 = arith.cmpi ne, %1, %c0_i32_0 : i32
    scf.if %2 {
      %c0_8 = arith.constant 0 : index
      %c0_9 = arith.constant 0 : index
      %10 = vector.load %arg2[%c0_8, %c0_9] : memref<24x128xf32, #tpu.memory_space<vmem>>, vector<24x128xf32>
      %11 = math.tanh %10 : vector<24x128xf32>
      %12 = arith.truncf %11 : vector<24x128xf32> to vector<24x128xbf16>
      %c0_10 = arith.constant 0 : index
      %c0_11 = arith.constant 0 : index
      %13 = vector.load %arg6[%c0_10, %c0_11] : memref<24x128xbf16, #tpu.memory_space<vmem>>, vector<24x128xbf16>
      tpu.vector_store %arg6[%c0_10, %c0_11], %12 {strides = array<i32>} : memref<24x128xbf16, #tpu.memory_space<vmem>>, vector<24x128xbf16>,
    } else {
    }
    %c0 = arith.constant 0 : index
    %c0_1 = arith.constant 0 : index
    %3 = vector.load %arg6[%c0, %c0_1] : memref<24x128xbf16, #tpu.memory_space<vmem>>, vector<24x128xbf16>
    %c0_2 = arith.constant 0 : index
    %c0_3 = arith.constant 0 : index
    %4 = vector.load %arg3[%c0_2, %c0_3] : memref<128x128xbf16, #tpu.memory_space<vmem>>, vector<128x128xbf16>
    %cst = arith.constant dense<0.000000e+00> : vector<24x128xf32>
    %5 = tpu.matmul %3, %4, %cst {dimension_numbers = #tpu.dot_dimension_numbers<[1], [0], [0], [1], [0, 0, 1, 1], [], []>} : vector<24x128xbf16>, vector<128x128xbf16>, vector<24x128xf32> -> vector<24x128xf32>
    %c0_4 = arith.constant 0 : index
    %c0_5 = arith.constant 0 : index
    %6 = vector.load %arg4[%c0_4, %c0_5] : memref<1x128xf32, #tpu.memory_space<vmem>>, vector<1x128xf32>
    %7 = vector.broadcast %6 : vector<1x128xf32> to vector<24x128xf32>
    %8 = arith.addf %5, %7 : vector<24x128xf32>
    %c0_6 = arith.constant 0 : index
    %c0_7 = arith.constant 0 : index
    %9 = vector.load %arg5[%c0_6, %c0_7] : memref<24x128xf32, #tpu.memory_space<vmem>>, vector<24x128xf32>
    tpu.vector_store %arg5[%c0_6, %c0_7], %8 {strides = array<i32>} : memref<24x128xf32, #tpu.memory_space<vmem>>, vector<24x128xf32>,
    return
  }
  func.func @transform_0(%arg0: i32, %arg1: i32) -> (i32, i32) {
    %c0_i32 = arith.constant 0 : i32
    %c0_i32_0 = arith.constant 0 : i32
    return %arg0, %c0_i32 : i32, i32
  }
  func.func @transform_1(%arg0: i32, %arg1: i32) -> (i32, i32) {
    %c0_i32 = arith.constant 0 : i32
    %c0_i32_0 = arith.constant 0 : i32
    return %c0_i32, %arg1 : i32, i32
  }
  func.func @transform_2(%arg0: i32, %arg1: i32) -> (i32, i32) {
    %c0_i32 = arith.constant 0 : i32
    %c0_i32_0 = arith.constant 0 : i32
    return %c0_i32, %arg1 : i32, i32
  }
  func.func @transform_3(%arg0: i32, %arg1: i32) -> (i32, i32) {
    %c0_i32 = arith.constant 0 : i32
    return %arg0, %arg1 : i32, i32
  }
}

</mosaic_0001>

<bundles_post_ra>
// kernel: tpu_custom_call.1
= control target key start
LH: loop header
LB: loop body
LE: loop exit
PB: predicated region body
PF: predicated region fallthrough
CT: control target
= control target key end

     0   :  { %8 = vsyncpa [#allocation4], 0  ;;  %s380_s0 = inlined_call_operand.hbm [shape: f32[24,128], index: 0, kind: input, shape index: {}]   ;;  %s381_s1 = inlined_call_operand.hbm [shape: bf16[128,128], index: 1, kind: input, shape index: {}]   ;;  %s382_s2 = inlined_call_operand.vmem [shape: f32[1,128], index: 2, kind: input, shape index: {}]   ;;  %s383_s3 = inlined_call_operand.hbm [shape: f32[24,128], index: 3, kind: output, shape index: {}]  }
   0x1   :  { %9 = vsyncpa [#allocation7], 0 }
   0x2   :  { %10 = vsyncpa [#allocation5], 0  ;;  %s15_s14 = sshll.u32 %s380_s0, 4  ;;  %s335_s15 = smov [#allocation3]   ;;  %s16_s14 = int_to_ptr.hbm [resolvable:$true] %s15_s14 }
   0x3   :  { %s17_s16 = sshll.u32 %s335_s15, 4  ;;  %s28_s19 = sshll.u32 %s381_s1, 4  ;;  %s18_s16 = int_to_ptr.vmem [resolvable:$true] %s17_s16  ;;  %s29_s19 = int_to_ptr.hbm [resolvable:$true] %s28_s19 }
   0x4   :  { %s336_s20 = smov 128   ;;  %s337_s21 = smov 8  }
   0x5   :  { %23 = dma.hbm_to_vmem [thread:$0]  %s16_s14, 384, %s18_s16, [#allocation4], %s336_s20, %s336_s20, %s337_s21  }
   0x6   :  { %s338_s22 = smov [#allocation6]   ;;  %s339_s24 = smov 64  }
   0x7   :  { %s30_s23 = sshll.u32 %s338_s22, 4  ;;  %s340_s0 = smov 4   ;;  %s31_s23 = int_to_ptr.vmem [resolvable:$true] %s30_s23 }
   0x8   :  { %36 = dma.hbm_to_vmem [thread:$0]  %s29_s19, 1024, %s31_s23, [#allocation7], %s339_s24, %s339_s24, %s340_s0  }
   0x9   :  { %329 = dma.done.wait [#allocation4], 384  }
   0xa   :  { %330 = vsyncadd [#allocation4], 4294966912 }
   0xb   :  { %331 = dma.done.wait [#allocation7], 1024  }
   0xc   :  { %332 = vsyncadd [#allocation7], 4294966272  ;;  %v229_v0 = vld [vmem:[#allocation6 + $0x38] sm:$0xff]  ;;  %v228_v1 = vld [vmem:[#allocation6 + $0x30] sm:$0xff]  ;;  %s341_s26 = smov [#allocation8]   ;;  %s171_s30 = sshll.u32 %s383_s3, 4  ;;  %s172_s30 = int_to_ptr.hbm [resolvable:$true] %s171_s30 }
   0xd   :  { %144 = vmatpush.bf16.msra.mxu0 %v229_v0  ;;  %235 = vmatpush.bf16.msra.mxu1 %v229_v0  ;;  %v51_v2 = vld [vmem:[#allocation3] sm:$0xff]  ;;  %v52_v3 = vld [vmem:[#allocation3 + $0x8] sm:$0xff]  ;;  %v53_v4 = vld [vmem:[#allocation3 + $0x10] sm:$0xff]  ;;  %s169_s27 = sshll.u32 %s341_s26, 4  ;;  %s170_s27 = int_to_ptr.vmem [resolvable:$true] %s169_s27 }
   0xe   :  { %251 = vtanh.f32 %v51_v2  ;;  %v227_v5 = vld [vmem:[#allocation6 + $0x28] sm:$0xff]  ;;  %v226_v8 = vld [vmem:[#allocation6 + $0x20] sm:$0xff]  ;;  %v225_v12 = vld [vmem:[#allocation6 + $0x18] sm:$0xff] }
   0xf   :  { %253 = vtanh.f32 %v52_v3  ;;  %v224_v13 = vld [vmem:[#allocation6 + $0x10] sm:$0xff]  ;;  %v223_v14 = vld [vmem:[#allocation6 + $0x8] sm:$0xff]  ;;  %v222_v17 = vld [vmem:[#allocation6] sm:$0xff] }
  0x10   :  { %255 = vtanh.f32 %v53_v4  ;;  %v250_v20 = vld [vmem:[%s382_s2] ss:$0 sm:$0xff] }
  0x11   :  { %145 = vmatpush.bf16.msra.mxu0 %v228_v1  ;;  %236 = vmatpush.bf16.msra.mxu1 %v228_v1 }
  0x14   :  { %v252_v6 = vpop.eup %251 }
  0x15   :  { %v254_v7 = vpop.eup %253  ;;  %146 = vmatpush.bf16.msra.mxu0 %v227_v5  ;;  %237 = vmatpush.bf16.msra.mxu1 %v227_v5 }
  0x16   :  { %v256_v9 = vpop.eup %255  ;;  %v233_v10 = vpack.c.bf16 %v254_v7, %v252_v6 }
  0x17   :  { %v59_v11 = vpack.c.bf16 %v256_v9, %v256_v9 }
  0x18   :  { %234 = vst [vmem:[#allocation2] sm:$0xff] %v233_v10  }
  0x19   :  { %147 = vmatpush.bf16.msra.mxu0 %v226_v8  ;;  %238 = vmatpush.bf16.msra.mxu1 %v226_v8  ;;  %62 = vst [vmem:[#allocation2 + $0x8] sm:$0xf] %v59_v11 }
  0x1d   :  { %148 = vmatpush.bf16.msra.mxu0 %v225_v12  ;;  %239 = vmatpush.bf16.msra.mxu1 %v225_v12 }
  0x1f   :  { %v221_v18 = vld [vmem:[#allocation2] sm:$0xff] }
  0x20   :  { %v65_v15 = vld [vmem:[#allocation2 + $0x8] sm:$0xf] }
  0x21   :  { %149 = vmatpush.bf16.msra.mxu0 %v224_v13  ;;  %240 = vmatpush.bf16.msra.mxu1 %v224_v13  ;;  %v91_v16 = vunpack.c.l.b16 %v65_v15 }
  0x23   :  { %v93_v19 = vpack.c.b16 %v91_v16, %v91_v16 }
  0x25   :  { %150 = vmatpush.bf16.msra.mxu0 %v223_v14  ;;  %241 = vmatpush.bf16.msra.mxu1 %v223_v14 }
  0x29   :  { %151 = vmatpush.bf16.msra.mxu0 %v222_v17  ;;  %242 = vmatpush.bf16.msra.mxu1 %v222_v17 }
  0x2c   :  { %152 = vmatmul.bf16.vlgmr.msra.gmra.mxu0 %v221_v18  ;;  %157 = vmatmul.bf16.vlgmr.msra.gmra.mxu1 %v93_v19 }
  0xa9   :  { %v153_v21 = vpop.f32.mrf.mxu0  ;;  %v158_v22 = vpop.f32.mrf.mxu1 }
  0xaa   :  { %v154_v23 = vadd.f32 %v250_v20, %v153_v21  ;;  %v159_v24 = vadd.f32 %v250_v20, %v158_v22 }
  0xac   :  { %162 = vst [vmem:[#allocation8] sm:$0xff] %v154_v23 }
  0xad   :  { %164 = vst [vmem:[#allocation8 + $0x10] sm:$0xff] %v159_v24 }
  0xb1   :  { %v155_v25 = vpop.f32.mrf.mxu0  ;;  %v160_v26 = vpop.f32.mrf.mxu1 }
  0xb2   :  { %v156_v27 = vadd.f32 %v250_v20, %v155_v25 }
  0xb4   :  { %163 = vst [vmem:[#allocation8 + $0x8] sm:$0xff] %v156_v27 }
  0xb5   :  { %177 = dma.vmem_to_hbm [thread:$0]  %s170_s27, 384, %s172_s30, [#allocation5], %s336_s20, %s336_s20, %s337_s21  }
  0xb6   :  { %333 = dma.done.wait [#allocation5], 384  }
  0xb7   :  { %334 = vsyncadd [#allocation5], 4294966912 }
  0xb8   :  { %182 = vsyncpa [#allocation4], 1 }
  0xb9   :  { %183 = vsyncpa [#allocation7], 1 }
  0xba   :  { %184 = vsyncpa [#allocation5], 1 }

</bundles_post_ra>
